<compile_context>
chip_gen: v6e
topology: v6e:2x2x1
jax: 0.10.0
libtpu: 0.0.40
codegen_flags: <defaults>
</compile_context>

<pallas_src>
import jax
import jax.numpy as jnp
from jax.experimental import pallas as pl
from jax.experimental.pallas import tpu as pltpu


def mlp_kernel(x_ref, w1_ref, b1_ref, w2_ref, b2_ref, w3_ref, b3_ref, o_ref):
    x = x_ref[...]                                        # (11, TB)

    # fc1 + ReLU : (32, 11) @ (11, TB) -> (32, TB)
    h1 = jnp.dot(w1_ref[...], x, preferred_element_type=jnp.float32) + b1_ref[...]
    h1 = jnp.maximum(h1, 0.0)

    # fc2 + ReLU : (32, 32) @ (32, TB) -> (32, TB)
    h2 = jnp.dot(w2_ref[...], h1, preferred_element_type=jnp.float32) + b2_ref[...]
    h2 = jnp.maximum(h2, 0.0)

    # fc4 (logits) : (2, 32) @ (32, TB) -> (2, TB)
    logits = jnp.dot(w3_ref[...], h2, preferred_element_type=jnp.float32) + b3_ref[...]

    # log_softmax over the 2 classes (on sublanes) with explicit 2-row math:
    # avoids cross-lane XLU reductions; exp/log go to the EUP slot.
    l0 = logits[0:1, :]                                    # (1, TB)
    l1 = logits[1:2, :]                                    # (1, TB)
    m = jnp.maximum(l0, l1)                                # (1, TB)
    lse = m + jnp.log(jnp.exp(l0 - m) + jnp.exp(l1 - m))   # (1, TB)
    o_ref[...] = logits - lse                              # broadcast over sublanes


def _round_up(n, m):
    return ((n + m - 1) // m) * m


def neural_network_forward(x, params, *, max_tb=2048):
    """x: (B, 11) float32. params: (W1,b1,W2,b2,W3,b3) in PyTorch-native layout
    with weights (out, in) and biases (out, 1). Returns (B, 2) log-probs."""
    w1, b1, w2, b2, w3, b3 = params
    B = x.shape[0]

    # Batch tile on the lane axis: multiple of 128, capped (VMEM-safe everywhere).
    TB = min(max_tb, _round_up(B, 128))
    Bp = _round_up(B, TB)

    # Pad batch and put it on the lane (last) axis. The wrapper-side transpose
    # is layout plumbing done once by XLA; it keeps the kernel free of any
    # in-kernel XLU transposes and keeps stores lane-dense.
    x_pad = jnp.pad(x.astype(jnp.float32), ((0, Bp - B), (0, 0)))
    xT = x_pad.T                                           # (11, Bp)

    const = lambda shape: pl.BlockSpec(shape, lambda i: (0, 0))

    outT = pl.pallas_call(
        mlp_kernel,
        out_shape=jax.ShapeDtypeStruct((2, Bp), jnp.float32),
        grid=(Bp // TB,),
        in_specs=[
            pl.BlockSpec((11, TB), lambda i: (0, i)),      # x tile (batch on lanes)
            const(w1.shape), const(b1.shape),              # (32, 11), (32, 1)
            const(w2.shape), const(b2.shape),              # (32, 32), (32, 1)
            const(w3.shape), const(b3.shape),              # (2, 32),  (2, 1)
        ],
        out_specs=pl.BlockSpec((2, TB), lambda i: (0, i)),
        compiler_params=pltpu.CompilerParams(
            dimension_semantics=("parallel",)),
    )(xT, w1, b1, w2, b2, w3, b3)

    return outT[:, :B].T                                   # (B, 2)


def init_params(key):
    """PyTorch Linear default init: U(-1/sqrt(fan_in), 1/sqrt(fan_in)).
    Weights stored PyTorch-native (out_features, in_features); biases (out, 1)."""
    dims = [(11, 32), (32, 32), (32, 2)]
    params = []
    for (fan_in, fan_out) in dims:
        key, kw, kb = jax.random.split(key, 3)
        bound = 1.0 / jnp.sqrt(float(fan_in))
        w = jax.random.uniform(kw, (fan_out, fan_in), jnp.float32, -bound, bound)
        b = jax.random.uniform(kb, (fan_out, 1), jnp.float32, -bound, bound)
        params += [w, b]
    return tuple(params)


def reference_forward(x, params):
    """Pure-JAX reference matching the PyTorch module."""
    w1, b1, w2, b2, w3, b3 = params
    h1 = jnp.maximum(x @ w1.T + b1[:, 0], 0.0)
    h2 = jnp.maximum(h1 @ w2.T + b2[:, 0], 0.0)
    logits = h2 @ w3.T + b3[:, 0]
    return jax.nn.log_softmax(logits, axis=-1)


if __name__ == "__main__":
    key = jax.random.PRNGKey(0)
    key, kx = jax.random.split(key)

    B = 8  # small example batch
    x = jax.random.normal(kx, (B, 11), dtype=jnp.float32)

    params = init_params(key)

    out = neural_network_forward(x, params)
    out = jax.block_until_ready(out)

    assert out.shape == (B, 2)

    # sanity 1: log-softmax rows exponentiate-and-sum to ~1
    row_sums = jnp.exp(out).sum(axis=-1)
    assert jnp.allclose(row_sums, 1.0, atol=1e-5)

    # sanity 2: matches the pure-JAX reference of the PyTorch forward pass
    ref = reference_forward(x, params)
    assert jnp.allclose(out, ref, atol=1e-5, rtol=1e-5)

    print("KERNEL_OK")
</pallas_src>

<mosaic_0001>
module attributes {stable_mosaic.version = 11 : i64} {
  func.func @mlp_kernel(%arg0: i32, %arg1: memref<11x128xf32, #tpu.memory_space<vmem>>, %arg2: memref<32x11xf32, #tpu.memory_space<vmem>>, %arg3: memref<32x1xf32, #tpu.memory_space<vmem>>, %arg4: memref<32x32xf32, #tpu.memory_space<vmem>>, %arg5: memref<32x1xf32, #tpu.memory_space<vmem>>, %arg6: memref<2x32xf32, #tpu.memory_space<vmem>>, %arg7: memref<2x1xf32, #tpu.memory_space<vmem>>, %arg8: memref<2x128xf32, #tpu.memory_space<vmem>>) attributes {dimension_semantics = [#tpu.dimension_semantics<parallel>], iteration_bounds = array<i64: 1>, scalar_prefetch = 0 : i64, scratch_operands = 0 : i64, tpu.core_type = #tpu.core_type<tc>, window_params = [{transform_indices = @transform_0, window_bounds = array<i64: 11, 128>}, {pipeline_mode = #tpu.pipeline_mode<synchronous>, transform_indices = @transform_1, window_bounds = array<i64: 32, 11>}, {pipeline_mode = #tpu.pipeline_mode<synchronous>, transform_indices = @transform_2, window_bounds = array<i64: 32, 1>}, {pipeline_mode = #tpu.pipeline_mode<synchronous>, transform_indices = @transform_3, window_bounds = array<i64: 32, 32>}, {pipeline_mode = #tpu.pipeline_mode<synchronous>, transform_indices = @transform_4, window_bounds = array<i64: 32, 1>}, {pipeline_mode = #tpu.pipeline_mode<synchronous>, transform_indices = @transform_5, window_bounds = array<i64: 2, 32>}, {pipeline_mode = #tpu.pipeline_mode<synchronous>, transform_indices = @transform_6, window_bounds = array<i64: 2, 1>}, {transform_indices = @transform_7, window_bounds = array<i64: 2, 128>}]} {
    %c0 = arith.constant 0 : index
    %c0_0 = arith.constant 0 : index
    %0 = vector.load %arg1[%c0, %c0_0] : memref<11x128xf32, #tpu.memory_space<vmem>>, vector<11x128xf32>
    %c0_1 = arith.constant 0 : index
    %c0_2 = arith.constant 0 : index
    %1 = vector.load %arg2[%c0_1, %c0_2] : memref<32x11xf32, #tpu.memory_space<vmem>>, vector<32x11xf32>
    %cst = arith.constant dense<0.000000e+00> : vector<32x128xf32>
    %2 = tpu.matmul %1, %0, %cst {dimension_numbers = #tpu.dot_dimension_numbers<[1], [0], [0], [1], [0, 0, 1, 1], [], []>} : vector<32x11xf32>, vector<11x128xf32>, vector<32x128xf32> -> vector<32x128xf32>
    %c0_3 = arith.constant 0 : index
    %c0_4 = arith.constant 0 : index
    %3 = vector.load %arg3[%c0_3, %c0_4] : memref<32x1xf32, #tpu.memory_space<vmem>>, vector<32x1xf32>
    %4 = vector.broadcast %3 : vector<32x1xf32> to vector<32x128xf32>
    %5 = arith.addf %2, %4 : vector<32x128xf32>
    %cst_5 = arith.constant 0.000000e+00 : f32
    %6 = vector.broadcast %cst_5 : f32 to vector<32x128xf32>
    %7 = arith.maximumf %5, %6 : vector<32x128xf32>
    %c0_6 = arith.constant 0 : index
    %c0_7 = arith.constant 0 : index
    %8 = vector.load %arg4[%c0_6, %c0_7] : memref<32x32xf32, #tpu.memory_space<vmem>>, vector<32x32xf32>
    %cst_8 = arith.constant dense<0.000000e+00> : vector<32x128xf32>
    %9 = tpu.matmul %8, %7, %cst_8 {dimension_numbers = #tpu.dot_dimension_numbers<[1], [0], [0], [1], [0, 0, 1, 1], [], []>} : vector<32x32xf32>, vector<32x128xf32>, vector<32x128xf32> -> vector<32x128xf32>
    %c0_9 = arith.constant 0 : index
    %c0_10 = arith.constant 0 : index
    %10 = vector.load %arg5[%c0_9, %c0_10] : memref<32x1xf32, #tpu.memory_space<vmem>>, vector<32x1xf32>
    %11 = vector.broadcast %10 : vector<32x1xf32> to vector<32x128xf32>
    %12 = arith.addf %9, %11 : vector<32x128xf32>
    %cst_11 = arith.constant 0.000000e+00 : f32
    %13 = vector.broadcast %cst_11 : f32 to vector<32x128xf32>
    %14 = arith.maximumf %12, %13 : vector<32x128xf32>
    %c0_12 = arith.constant 0 : index
    %c0_13 = arith.constant 0 : index
    %15 = vector.load %arg6[%c0_12, %c0_13] : memref<2x32xf32, #tpu.memory_space<vmem>>, vector<2x32xf32>
    %cst_14 = arith.constant dense<0.000000e+00> : vector<2x128xf32>
    %16 = tpu.matmul %15, %14, %cst_14 {dimension_numbers = #tpu.dot_dimension_numbers<[1], [0], [0], [1], [0, 0, 1, 1], [], []>} : vector<2x32xf32>, vector<32x128xf32>, vector<2x128xf32> -> vector<2x128xf32>
    %c0_15 = arith.constant 0 : index
    %c0_16 = arith.constant 0 : index
    %17 = vector.load %arg7[%c0_15, %c0_16] : memref<2x1xf32, #tpu.memory_space<vmem>>, vector<2x1xf32>
    %18 = vector.broadcast %17 : vector<2x1xf32> to vector<2x128xf32>
    %19 = arith.addf %16, %18 : vector<2x128xf32>
    %20 = vector.extract_strided_slice %19 {offsets = [0, 0], sizes = [1, 128], strides = [1, 1]} : vector<2x128xf32> to vector<1x128xf32>
    %21 = vector.extract_strided_slice %19 {offsets = [1, 0], sizes = [1, 128], strides = [1, 1]} : vector<2x128xf32> to vector<1x128xf32>
    %22 = arith.maximumf %20, %21 : vector<1x128xf32>
    %23 = arith.subf %20, %22 : vector<1x128xf32>
    %24 = math.exp %23 : vector<1x128xf32>
    %25 = arith.subf %21, %22 : vector<1x128xf32>
    %26 = math.exp %25 : vector<1x128xf32>
    %27 = arith.addf %24, %26 : vector<1x128xf32>
    %28 = math.log %27 : vector<1x128xf32>
    %29 = arith.addf %22, %28 : vector<1x128xf32>
    %30 = vector.broadcast %29 : vector<1x128xf32> to vector<2x128xf32>
    %31 = arith.subf %19, %30 : vector<2x128xf32>
    %c0_17 = arith.constant 0 : index
    %c0_18 = arith.constant 0 : index
    %32 = vector.load %arg8[%c0_17, %c0_18] : memref<2x128xf32, #tpu.memory_space<vmem>>, vector<2x128xf32>
    tpu.vector_store %arg8[%c0_17, %c0_18], %31 {strides = array<i32>} : memref<2x128xf32, #tpu.memory_space<vmem>>, vector<2x128xf32>,
    return
  }
  func.func @transform_0(%arg0: i32) -> (i32, i32) {
    %c0_i32 = arith.constant 0 : i32
    %c0_i32_0 = arith.constant 0 : i32
    return %c0_i32, %arg0 : i32, i32
  }
  func.func @transform_1(%arg0: i32) -> (i32, i32) {
    %c0_i32 = arith.constant 0 : i32
    %c0_i32_0 = arith.constant 0 : i32
    %c0_i32_1 = arith.constant 0 : i32
    return %c0_i32, %c0_i32_0 : i32, i32
  }
  func.func @transform_2(%arg0: i32) -> (i32, i32) {
    %c0_i32 = arith.constant 0 : i32
    %c0_i32_0 = arith.constant 0 : i32
    %c0_i32_1 = arith.constant 0 : i32
    return %c0_i32, %c0_i32_0 : i32, i32
  }
  func.func @transform_3(%arg0: i32) -> (i32, i32) {
    %c0_i32 = arith.constant 0 : i32
    %c0_i32_0 = arith.constant 0 : i32
    %c0_i32_1 = arith.constant 0 : i32
    return %c0_i32, %c0_i32_0 : i32, i32
  }
  func.func @transform_4(%arg0: i32) -> (i32, i32) {
    %c0_i32 = arith.constant 0 : i32
    %c0_i32_0 = arith.constant 0 : i32
    %c0_i32_1 = arith.constant 0 : i32
    return %c0_i32, %c0_i32_0 : i32, i32
  }
  func.func @transform_5(%arg0: i32) -> (i32, i32) {
    %c0_i32 = arith.constant 0 : i32
    %c0_i32_0 = arith.constant 0 : i32
    %c0_i32_1 = arith.constant 0 : i32
    return %c0_i32, %c0_i32_0 : i32, i32
  }
  func.func @transform_6(%arg0: i32) -> (i32, i32) {
    %c0_i32 = arith.constant 0 : i32
    %c0_i32_0 = arith.constant 0 : i32
    %c0_i32_1 = arith.constant 0 : i32
    return %c0_i32, %c0_i32_0 : i32, i32
  }
  func.func @transform_7(%arg0: i32) -> (i32, i32) {
    %c0_i32 = arith.constant 0 : i32
    %c0_i32_0 = arith.constant 0 : i32
    return %c0_i32, %arg0 : i32, i32
  }
}

</mosaic_0001>

<bundles_post_ra>
// kernel: tpu_custom_call.1
= control target key start
LH: loop header
LB: loop body
LE: loop exit
PB: predicated region body
PF: predicated region fallthrough
CT: control target
= control target key end

     0   :  { %vm70_vm0 = vcmask 1042432   ;;  %vm57_vm1 = vcmask 89088   ;;  %v511_v4 = vmov 0   ;;  %s627_s0 = inlined_call_operand.vmem [shape: f32[11,128], index: 0, kind: input, shape index: {}]   ;;  %s628_s1 = inlined_call_operand.vmem [shape: f32[32,11], index: 1, kind: input, shape index: {}]   ;;  %s629_s2 = inlined_call_operand.vmem [shape: f32[32,1], index: 2, kind: input, shape index: {}]   ;;  %s630_s3 = inlined_call_operand.vmem [shape: f32[32,32], index: 3, kind: input, shape index: {}]   ;;  %s631_s4 = inlined_call_operand.vmem [shape: f32[32,1], index: 4, kind: input, shape index: {}]   ;;  %s632_s5 = inlined_call_operand.vmem [shape: f32[2,32], index: 5, kind: input, shape index: {}]   ;;  %s633_s6 = inlined_call_operand.vmem [shape: f32[2,1], index: 6, kind: input, shape index: {}]   ;;  %s634_s7 = inlined_call_operand.hbm [shape: f32[2,128], index: 7, kind: output, shape index: {}]  }
   0x1   :  { %v28_v0 = vld [vmem:[%s627_s0 + $0x8] sm:$0x7]  ;;  %v27_v1 = vld [vmem:[%s627_s0] sm:$0xff]  ;;  %481 = vset.pattern.permute.xlu0 %v511_v4  ;;  %v36_v5 = vld [vmem:[%s629_s2 + $0x18] sm:$0xff]  ;;  %482 = vset.pattern.permute.xlu1 %v511_v4 }
   0x2   :  { %v29_v2 = vld [vmem:[%s628_s1] sm:$0xff]  ;;  %442 = vmatprep.subr.msk.mxu0 %vm70_vm0, %v28_v0  ;;  %v30_v3 = vld [vmem:[%s628_s1 + $0x8] sm:$0xff]  ;;  %v31_v6 = vld [vmem:[%s628_s1 + $0x10] sm:$0xff]  ;;  %54 = vperm.xlu0 %481, %v36_v5  }
   0x3   :  { %446 = vmatprep.mubr.msk.f32.mxu0 %vm57_vm1, %v29_v2  ;;  %443 = vmatpush3.msk.msra.mxu0 %vm70_vm0, %v28_v0  ;;  %v34_v7 = vld [vmem:[%s629_s2 + $0x8] sm:$0xff]  ;;  %v35_v8 = vld [vmem:[%s629_s2 + $0x10] sm:$0xff] }
   0x4   :  { %444 = vmatprep.subr.mxu0 %v27_v1  ;;  %44 = vperm.xlu1 %482, %v34_v7  }
   0x5   :  { %445 = vmatpush3.msra.mxu0 %v27_v1 }
   0x6   :  { %447 = vmatmul.mubr.msk.f32.vlgmr.msra.gmra.mxu0 %vm57_vm1, %v30_v3 }
   0x7   :  { %12 = vsyncpa [#allocation3], 0  ;;  %449 = vmatprep.mubr.msk.f32.mxu0 %vm57_vm1, %v31_v6  ;;  %v32_v9 = vld [vmem:[%s628_s1 + $0x18] sm:$0xff]  ;;  %v33_v10 = vld [vmem:[%s629_s2] sm:$0xff]  ;;  %49 = vperm.xlu0 %481, %v35_v8   ;;  %vm191_vm2 = vcmask 261120   ;;  %v512_v36 = vmov 0.0   ;;  %v393_v5 = vlaneseq }
   0x8   :  { %v170_v11 = vld [vmem:[%s631_s4 + $0x18] sm:$0xff]  ;;  %39 = vperm.xlu1 %482, %v33_v10   ;;  %v169_v12 = vld [vmem:[%s631_s4 + $0x10] sm:$0xff]  ;;  %v168_v13 = vld [vmem:[%s631_s4 + $0x8] sm:$0xff]  ;;  %466 = vmatprep.subr.mxu0 %v512_v36  ;;  %vm513_vm3 = vmmov 0  }
   0x9   :  { %v167_v14 = vld [vmem:[%s631_s4] sm:$0xff]  ;;  %v164_v33 = vld [vmem:[%s630_s3 + $0x8] sm:$0xff]  ;;  %v165_v34 = vld [vmem:[%s630_s3 + $0x10] sm:$0xff]  ;;  %v394_v6 = vshrl.u32 %v393_v5, 7 }
   0xa   :  { %450 = vmatmul.mubr.msk.f32.gmra.mxu0 %vm57_vm1, %v32_v9  ;;  %v294_v15 = vld [vmem:[%s633_s6] sm:$0x3]  ;;  %v166_v35 = vld [vmem:[%s630_s3 + $0x18] sm:$0xff] }
   0xb   :  { %188 = vperm.xlu0 %481, %v170_v11   ;;  %v163_v16 = vld [vmem:[%s630_s3] sm:$0xff]  ;;  %474 = vmatprep.mubr.msk.f32.mxu0 %vm513_vm3, %v512_v36  ;;  %v395_v9 = vsub.s32 0, %v394_v6 }
   0xc   :  { %183 = vperm.xlu1 %482, %v169_v12   ;;  %460 = vmatprep.mubr.msk.f32.mxu1 %vm191_vm2, %v163_v16  ;;  %v293_v53 = vld [vmem:[%s632_s5] sm:$0x3]  ;;  %s514_s5 = smov [#allocation2]  }
   0xd   :  { %s405_s11 = sshll.u32 %s514_s5, 4  ;;  %s406_s11 = int_to_ptr.vmem [resolvable:$true] %s405_s11 }
   0xe   :  { %s489_s12 = scalar_lea.vmem %s406_s11, 32  ;;  %p494_p1 = scmp.lt.s32.totalorder %s406_s11, %s406_s11 }
   0xf   :  { %178 = vperm.xlu0 %481, %v168_v13   ;;  %p490_p0 = scmp.ne.s32.totalorder %s406_s11, %s489_s12  ;;  %p495_p2 = scmp.lt.s32.totalorder %s489_s12, %s489_s12 }
  0x10   :  { %173 = vperm.xlu1 %482, %v167_v14  }
  0x11   :  { %p496_p3 = por %p495_p2, %p494_p1 }
  0x13   :  { %297 = vperm.xlu0 %481, %v294_v15   ;;  %p497_p4 = pnand %p496_p3, %p490_p0 }
  0x7d   :  { %v55_v17 = vpop.permute.xlu0 %54 }
  0x7f   :  { %v45_v19 = vpop.permute.xlu1 %44 }
  0x82   :  { %v50_v23 = vpop.permute.xlu0 %49 }
  0x83   :  { %v40_v28 = vpop.permute.xlu1 %39 }
  0x86   :  { %v189_v37 = vpop.permute.xlu0 %188 }
  0x87   :  { %v184_v39 = vpop.permute.xlu1 %183 }
  0x8a   :  { %v179_v43 = vpop.permute.xlu0 %178 }
  0x8b   :  { %v174_v48 = vpop.permute.xlu1 %173 }
  0x8e   :  { %v298_v54 = vpop.permute.xlu0 %297 }
  0xc6   :  { %v448_v18 = vpop.f32.mrf.mxu0 }
  0xc7   :  { %v146_v25 = vadd.f32 %v448_v18, %v45_v19 }
  0xc8   :  { %v140_v20 = vpop.f32.mrf.mxu0 }
  0xc9   :  { %v141_v29 = vadd.f32 %v140_v20, %v40_v28  ;;  %v160_v31 = vmax.f32 %v146_v25, 0.0 }
  0xca   :  { %v451_v21 = vpop.f32.mrf.mxu0 }
  0xcb   :  { %v156_v22 = vadd.f32 %v451_v21, %v55_v17  ;;  %v159_v32 = vmax.f32 %v141_v29, 0.0 }
  0xcc   :  { %v150_v24 = vpop.f32.mrf.mxu0 }
  0xcd   :  { %v162_v26 = vmax.f32 %v156_v22, 0.0  ;;  %v151_v27 = vadd.f32 %v150_v24, %v50_v23 }
  0xcf   :  { %v161_v30 = vmax.f32 %v151_v27, 0.0  ;;  %452 = vmatprep.subr.mxu1 %v162_v26 }
  0xd0   :  { %453 = vmatpush3.msra.mxu1 %v162_v26 }
  0xd1   :  { %454 = vmatprep.subr.mxu1 %v161_v30 }
  0xd2   :  { %455 = vmatpush3.msra.mxu1 %v161_v30 }
  0xd3   :  { %456 = vmatprep.subr.mxu1 %v160_v31 }
  0xd4   :  { %457 = vmatpush3.msra.mxu1 %v160_v31 }
  0xd5   :  { %458 = vmatprep.subr.mxu1 %v159_v32 }
  0xd6   :  { %459 = vmatpush3.msra.mxu1 %v159_v32 }
  0xd7   :  { %461 = vmatmul.mubr.msk.f32.vlgmr.msra.gmra.mxu1 %vm191_vm2, %v164_v33 }
  0xd8   :  { %463 = vmatprep.mubr.msk.f32.mxu1 %vm191_vm2, %v165_v34 }
  0xdb   :  { %464 = vmatmul.mubr.msk.f32.gmra.mxu1 %vm191_vm2, %v166_v35 }
 0x197   :  { %v462_v38 = vpop.f32.mrf.mxu1 }
 0x198   :  { %v276_v45 = vadd.f32 %v462_v38, %v179_v43 }
 0x199   :  { %v270_v40 = vpop.f32.mrf.mxu1 }
 0x19a   :  { %v271_v49 = vadd.f32 %v270_v40, %v174_v48  ;;  %v290_v51 = vmax.f32 %v276_v45, 0.0 }
 0x19b   :  { %v465_v41 = vpop.f32.mrf.mxu1 }
 0x19c   :  { %v286_v42 = vadd.f32 %v465_v41, %v189_v37  ;;  %v289_v52 = vmax.f32 %v271_v49, 0.0 }
 0x19d   :  { %v280_v44 = vpop.f32.mrf.mxu1 }
 0x19e   :  { %v292_v46 = vmax.f32 %v286_v42, 0.0  ;;  %v281_v47 = vadd.f32 %v280_v44, %v184_v39 }
 0x1a0   :  { %v291_v50 = vmax.f32 %v281_v47, 0.0  ;;  %467 = vmatpush3.msra.mxu0 %v292_v46 }
 0x1a1   :  { %468 = vmatprep.subr.mxu0 %v512_v36 }
 0x1a2   :  { %469 = vmatpush3.msra.mxu0 %v291_v50 }
 0x1a3   :  { %470 = vmatprep.subr.mxu0 %v512_v36 }
 0x1a4   :  { %471 = vmatpush3.msra.mxu0 %v290_v51 }
 0x1a5   :  { %472 = vmatprep.subr.mxu0 %v512_v36 }
 0x1a6   :  { %473 = vmatpush3.msra.mxu0 %v289_v52 }
 0x1a7   :  { %475 = vmatmul.mubr.msk.f32.vlgmr.msra.gmra.mxu0 %vm191_vm2, %v293_v53 }
 0x267   :  { %v369_v55 = vpop.f32.mrf.mxu0 }
 0x268   :  { %v370_v56 = vadd.f32 %v369_v55, %v298_v54 }
 0x269   :  { %v476_v57 = vpop.f32.mrf.mxu0 }
 0x26a   :  { %v374_v58 = vrot.slane %v370_v56, 1 }
 0x26c   :  { %v376_v59 = vmax.f32 %v370_v56, %v374_v58 }
 0x26e   :  { %v377_v60 = vsub.f32 %v370_v56, %v376_v59  ;;  %v381_v61 = vrot.slane %v376_v59, 7 }
 0x270   :  { %v383_v62 = vsub.f32 %v370_v56, %v381_v61  ;;  %v378_v63 = vmul.f32 1.442695, %v377_v60 }
 0x272   :  { %v384_v0 = vmul.f32 1.442695, %v383_v62 }
 0x274   :  { %483 = vpow2.f32 %v384_v0 }
 0x275   :  { %485 = vpow2.f32 %v378_v63 }
 0x281   :  { %v484_v1 = vpop.eup %483 }
 0x282   :  { %v387_v2 = vrot.slane %v484_v1, 1  ;;  %v486_v3 = vpop.eup %485 }
 0x284   :  { %v389_v4 = vadd.f32 %v486_v3, %v387_v2 }
 0x286   :  { %487 = vlog2.f32 %v389_v4 }
 0x293   :  { %v488_v7 = vpop.eup %487 }
 0x294   :  { %v391_v8 = vmul.f32 0.6931472, %v488_v7 }
 0x296   :  { %v392_v10 = vadd.f32 %v391_v8, %v376_v59 }
 0x298   :  { %v396_v11 = vrot.slane %v392_v10, %v395_v9 }
 0x29a   :  { %v397_v12 = vsub.f32 %v370_v56, %v396_v11 }
 0x29c   :  { %398 = vst [vmem:[#allocation2] sm:$0x3] %v397_v12 }
 0x29d   :  { %500 = shalt.err (!%p497_p4)
}
 0x29e   :  { %408 = dma.vmem_to_hbm [thread:$0]  %s406_s11, 32, %s634_s7, [#allocation3]  }
 0x29f   :  { %509 = dma.done.wait [#allocation3], 32  }
 0x2a0   :  { %510 = vsyncadd [#allocation3], 4294967264 }
 0x2a1   :  { %412 = vsyncpa [#allocation3], 1 }

</bundles_post_ra>
